<compile_context>
chip_gen: v7x
topology: tpu7x:2x2x1
jax: 0.10.0
libtpu: 0.0.40
codegen_flags: <defaults>
</compile_context>

<pallas_src>
import math

import numpy as np

import jax
import jax.numpy as jnp
from jax.experimental import pallas as pl
from jax.experimental.pallas import tpu as pltpu

# ----------------------------- configuration -------------------------------
HIDDEN_DIM = 32
NUM_HEADS = 4
HEAD_DIM = HIDDEN_DIM // NUM_HEADS
CACHE_SIZE = 16
HOT_CACHE_SIZE = max(4, CACHE_SIZE // 4)          # 4
COLD_CACHE_SIZE = CACHE_SIZE - HOT_CACHE_SIZE     # 12
COMPRESSED_DIM = max(1, int(HIDDEN_DIM * 0.5))    # 16
BATCH = 2
SEQ = 8
LN_EPS = 1e-5
SCALE = 1.0 / math.sqrt(HEAD_DIM)

# packed-column layout: [hot: head0 n0..3, head1 n0..3, ...][cold: head0 n0..11, ...]
NUM_PACKED = NUM_HEADS * (HOT_CACHE_SIZE + COLD_CACHE_SIZE)   # 64

# (start, width) of each (level, head) group in packed-column order
GROUP_SLICES = tuple(
    [(h * HOT_CACHE_SIZE, HOT_CACHE_SIZE) for h in range(NUM_HEADS)]
    + [(NUM_HEADS * HOT_CACHE_SIZE + h * COLD_CACHE_SIZE, COLD_CACHE_SIZE)
       for h in range(NUM_HEADS)]
)

# single lane-dense parameter slab: row offsets (all 8-aligned, cols start at 0)
ROW_KQ = 0                                        # rows   0: 32, cols 0:64  -> wq@K_packed
ROW_GM = ROW_KQ + HIDDEN_DIM                      # rows  32: 96, cols 0:64  -> group mask
ROW_VO = ROW_GM + NUM_PACKED                      # rows  96:160, cols 0:32  -> V_packed@wo
ROW_VEC = ROW_VO + NUM_PACKED                     # rows 160:168              -> vectors
SLAB_ROWS = ROW_VEC + 8                           # 168
SLAB_COLS = 128

# token-tile cap (review item #4): (tile,32) f32 lane-pads to 512 B/row, so
# double-buffered x + out at 4096 rows is ~8 MiB — safe even for v7x's 32 MiB
# scoped-VMEM default. On v5e/v6e (128 MiB VMEM) this could go higher still.
MAX_TILE_T = 4096


# ------------------------------- the kernel --------------------------------
def cache_aug_kernel(x_ref, p_ref, o_ref):
    x = x_ref[...]                                           # (T, H)

    # static, 8-aligned row slices of the single packed parameter slab
    kq = p_ref[ROW_KQ:ROW_KQ + HIDDEN_DIM, 0:NUM_PACKED]     # (H, NP)  wq@K, scale folded
    gmask = p_ref[ROW_GM:ROW_GM + NUM_PACKED, 0:NUM_PACKED]  # (NP, NP) same-(level,head) mask
    vo = p_ref[ROW_VO:ROW_VO + NUM_PACKED, 0:HIDDEN_DIM]     # (NP, H)  V_packed@wo
    vrow = p_ref[ROW_VEC:ROW_VEC + 8, :]                     # (8, 128) all vectors, one load

    sbias2 = vrow[0:1, 0:NUM_PACKED]                         # (1, NP)  bq@K + age/access bias
    bo2 = vrow[1:2, 0:HIDDEN_DIM]                            # (1, H)   2*bo
    gamma = vrow[2:3, 0:HIDDEN_DIM]                          # (1, H)
    beta = vrow[3:4, 0:HIDDEN_DIM]                           # (1, H)

    # scores for every (level, head, cache-entry) in one matmul; wq/bq folded
    s = jnp.dot(x, kq, preferred_element_type=jnp.float32) + sbias2       # (T, NP)

    # per-(level, head) max -> numerically safe segmented softmax.
    # Built with full-width iota/where/max ops only (no lane slicing/concat).
    col = jax.lax.broadcasted_iota(jnp.int32, s.shape, 1)
    gmax = jnp.zeros_like(s)
    for c0, w in GROUP_SLICES:
        in_g = (col >= c0) & (col < c0 + w)
        m_g = jnp.max(jnp.where(in_g, s, -1e30), axis=-1, keepdims=True)  # (T, 1)
        gmax = jnp.where(in_g, m_g, gmax)
    e = jnp.exp(s - gmax)

    # per-group denominators via one matmul with the group-membership mask
    denom = jnp.dot(e, gmask, preferred_element_type=jnp.float32)         # (T, NP)
    # approx reciprocal on the EUP + one Newton step (rel. err ~6e-8)
    r = pl.reciprocal(denom, approx=True)
    r = r * (2.0 - denom * r)
    attn = e * r

    # attention output with the output projection folded in:
    # (heads_hot + heads_cold) @ wo + 2*bo  ==  attn_packed @ VO + bo2
    y = jnp.dot(attn, vo, preferred_element_type=jnp.float32) + bo2       # (T, H)

    # LayerNorm
    mu = jnp.mean(y, axis=-1, keepdims=True)
    var = jnp.mean((y - mu) ** 2, axis=-1, keepdims=True)
    out = (y - mu) * jax.lax.rsqrt(var + LN_EPS) * gamma + beta
    o_ref[...] = out.astype(o_ref.dtype)


# --------------------------- one-time param packing --------------------------
def pack_params(p):
    """Hoists every x-independent computation out of the per-token kernel and
    packs all parameters into one lane-dense (SLAB_ROWS, 128) f32 slab."""
    H, hd, nh = HIDDEN_DIM, HEAD_DIM, NUM_HEADS
    Nh, Nc, NP = HOT_CACHE_SIZE, COLD_CACHE_SIZE, NUM_PACKED

    # cache-side projections (constant w.r.t. the inputs)
    k_hot = p["hot_keys"] @ p["wk"] + p["bk"]                              # (Nh, H)
    k_cold = p["cold_keys"] @ p["wk"] + p["bk"]                            # (Nc, H)
    v_hot = p["hot_values"] @ p["wv"] + p["bv"]                            # (Nh, H)
    v_cold = (p["cold_values"] @ p["wc"] + p["bc"]) @ p["wd"] + p["bd"]    # (Nc, H)

    # block-diagonal packed key/value slabs (per head, per level); the
    # 1/sqrt(hd) scale is folded into K_packed.
    K_packed = jnp.zeros((H, NP), jnp.float32)
    V_packed = jnp.zeros((NP, H), jnp.float32)
    for h in range(nh):
        dsl = slice(h * hd, (h + 1) * hd)
        hsl = slice(h * Nh, (h + 1) * Nh)
        csl = slice(nh * Nh + h * Nc, nh * Nh + (h + 1) * Nc)
        K_packed = K_packed.at[dsl, hsl].set(SCALE * k_hot[:, dsl].T)
        K_packed = K_packed.at[dsl, csl].set(SCALE * k_cold[:, dsl].T)
        V_packed = V_packed.at[hsl, dsl].set(v_hot[:, dsl])
        V_packed = V_packed.at[csl, dsl].set(v_cold[:, dsl])

    # age penalty / access bonus, broadcast per head, in packed-column order
    bias_hot = -0.1 * p["hot_age"] + 0.05 * p["hot_count"]                 # (Nh,)
    bias_cold = -0.1 * p["cold_age"] + 0.05 * p["cold_count"]              # (Nc,)
    sbias = jnp.concatenate([jnp.tile(bias_hot, nh), jnp.tile(bias_cold, nh)])

    # fold the query projection into the key side and the output projection
    # into the value side (review items #1 and #2):
    KQ = p["wq"] @ K_packed                                                # (H, NP)
    sbias2 = p["bq"] @ K_packed + sbias                                    # (NP,)
    VO = V_packed @ p["wo"]                                                # (NP, H)

    # same-(level, head) membership mask for the segmented softmax denominator
    gid = np.concatenate([np.repeat(np.arange(nh), Nh),
                          nh + np.repeat(np.arange(nh), Nc)])
    gmask = jnp.asarray((gid[:, None] == gid[None, :]).astype(np.float32))  # (NP, NP)

    # single lane-dense (SLAB_ROWS, 128) parameter slab -> 2 total kernel inputs
    slab = jnp.zeros((SLAB_ROWS, SLAB_COLS), jnp.float32)
    slab = slab.at[ROW_KQ:ROW_KQ + H, 0:NP].set(KQ)
    slab = slab.at[ROW_GM:ROW_GM + NP, 0:NP].set(gmask)
    slab = slab.at[ROW_VO:ROW_VO + NP, 0:H].set(VO)
    slab = slab.at[ROW_VEC + 0, 0:NP].set(sbias2)
    slab = slab.at[ROW_VEC + 1, 0:H].set(2.0 * p["bo"])   # bo added once per cache level
    slab = slab.at[ROW_VEC + 2, 0:H].set(p["ln_gamma"])
    slab = slab.at[ROW_VEC + 3, 0:H].set(p["ln_beta"])
    return slab


# ------------------------------- wrapper ------------------------------------
def cache_augmentation_forward(inputs, slab):
    """inputs: (B, S, H) float32 -> (B, S, H) float32"""
    B, S, H = inputs.shape
    total = B * S
    x2 = inputs.reshape(total, H)

    # Token tiling: as tall as VMEM comfortably allows; at total=16 the grid
    # is (1,), at scaled batch*seq the "parallel" axis shards across both
    # TensorCores on v7x.
    tile_t = min(total, MAX_TILE_T)
    n_tiles = pl.cdiv(total, tile_t)
    padded = n_tiles * tile_t
    if padded != total:
        x2 = jnp.pad(x2, ((0, padded - total), (0, 0)))

    out2 = pl.pallas_call(
        cache_aug_kernel,
        out_shape=jax.ShapeDtypeStruct((padded, H), jnp.float32),
        grid=(n_tiles,),
        in_specs=[
            pl.BlockSpec((tile_t, H), lambda i: (i, 0)),
            pl.BlockSpec((SLAB_ROWS, SLAB_COLS), lambda i: (0, 0)),
        ],
        out_specs=pl.BlockSpec((tile_t, H), lambda i: (i, 0)),
        compiler_params=pltpu.CompilerParams(
            dimension_semantics=("parallel",)),
    )(x2, slab)
    return out2[:total].reshape(B, S, H)


# --------------------------- pure-JAX reference ------------------------------
def reference_forward(inputs, p):
    """Faithful (unfused, per-head) replica of the PyTorch forward in eval mode."""
    B, S, H = inputs.shape
    x = inputs.reshape(B * S, H)
    q = x @ p["wq"] + p["bq"]

    def level(keys, values, age, count, is_hot):
        k = keys @ p["wk"] + p["bk"]
        if is_hot:
            v = values @ p["wv"] + p["bv"]
        else:
            v = (values @ p["wc"] + p["bc"]) @ p["wd"] + p["bd"]
        bias = (-0.1) * age + 0.05 * count
        outs = []
        for h in range(NUM_HEADS):
            sl = slice(h * HEAD_DIM, (h + 1) * HEAD_DIM)
            scores = (q[:, sl] @ k[:, sl].T) * SCALE + bias
            attn = jax.nn.softmax(scores, axis=-1)
            outs.append(attn @ v[:, sl])
        return jnp.concatenate(outs, axis=-1) @ p["wo"] + p["bo"]

    hot = level(p["hot_keys"], p["hot_values"], p["hot_age"], p["hot_count"], True)
    cold = level(p["cold_keys"], p["cold_values"], p["cold_age"], p["cold_count"], False)
    c = hot + cold
    mu = c.mean(-1, keepdims=True)
    var = ((c - mu) ** 2).mean(-1, keepdims=True)
    out = (c - mu) / jnp.sqrt(var + LN_EPS) * p["ln_gamma"] + p["ln_beta"]
    return out.reshape(B, S, H)


# ------------------------------ param init ----------------------------------
def init_params(key):
    ks = jax.random.split(key, 16)

    def normal(k, shape, std=0.02):
        return (std * jax.random.normal(k, shape)).astype(jnp.float32)

    def xavier(k, fan_in, fan_out):
        lim = math.sqrt(6.0 / (fan_in + fan_out))
        return jax.random.uniform(k, (fan_in, fan_out), jnp.float32, -lim, lim)

    H, Cd = HIDDEN_DIM, COMPRESSED_DIM
    p = {
        # cache banks (std 0.02 like the torch init)
        "hot_keys": normal(ks[0], (HOT_CACHE_SIZE, H)),
        "hot_values": normal(ks[1], (HOT_CACHE_SIZE, H)),
        "cold_keys": normal(ks[2], (COLD_CACHE_SIZE, H)),
        "cold_values": normal(ks[3], (COLD_CACHE_SIZE, H)),
        # age / access bookkeeping (non-zero to exercise the bias path)
        "hot_age": 0.5 * jnp.arange(HOT_CACHE_SIZE, dtype=jnp.float32),
        "hot_count": 0.25 * jnp.arange(HOT_CACHE_SIZE, dtype=jnp.float32),
        "cold_age": 0.5 * jnp.arange(COLD_CACHE_SIZE, dtype=jnp.float32),
        "cold_count": 0.25 * jnp.arange(COLD_CACHE_SIZE, dtype=jnp.float32),
        # attention projections: (in, out) layout, 1D biases
        "wq": normal(ks[4], (H, H)), "bq": jnp.zeros((H,), jnp.float32),
        "wk": normal(ks[5], (H, H)), "bk": jnp.zeros((H,), jnp.float32),
        "wv": normal(ks[6], (H, H)), "bv": jnp.zeros((H,), jnp.float32),
        "wo": normal(ks[7], (H, H)), "bo": jnp.zeros((H,), jnp.float32),
        # compressor / decompressor (xavier uniform like the torch init)
        "wc": xavier(ks[8], H, Cd), "bc": jnp.zeros((Cd,), jnp.float32),
        "wd": xavier(ks[9], Cd, H), "bd": jnp.zeros((H,), jnp.float32),
        # layernorm
        "ln_gamma": jnp.ones((H,), jnp.float32),
        "ln_beta": jnp.zeros((H,), jnp.float32),
    }
    return p


# --------------------------------- main --------------------------------------
if __name__ == "__main__":
    key = jax.random.PRNGKey(0)
    pkey, xkey = jax.random.split(key)
    params = init_params(pkey)
    slab = pack_params(params)            # one-time, x-independent precompute
    inputs = jax.random.normal(xkey, (BATCH, SEQ, HIDDEN_DIM), jnp.float32)

    out = cache_augmentation_forward(inputs, slab)
    out = jax.block_until_ready(out)

    ref = reference_forward(inputs, params)
    assert out.shape == (BATCH, SEQ, HIDDEN_DIM)
    max_err = jnp.max(jnp.abs(out - ref))
    assert jnp.allclose(out, ref, rtol=1e-4, atol=1e-4), f"max abs err {max_err}"

    print("KERNEL_OK")
</pallas_src>

<mosaic_0001>
module attributes {stable_mosaic.version = 11 : i64} {
  func.func @cache_aug_kernel(%arg0: i32, %arg1: memref<16x32xf32, #tpu.memory_space<vmem>>, %arg2: memref<168x128xf32, #tpu.memory_space<vmem>>, %arg3: memref<16x32xf32, #tpu.memory_space<vmem>>) attributes {dimension_semantics = [#tpu.dimension_semantics<parallel>], iteration_bounds = array<i64: 1>, scalar_prefetch = 0 : i64, scratch_operands = 0 : i64, tpu.core_type = #tpu.core_type<tc>, window_params = [{transform_indices = @transform_0, window_bounds = array<i64: 16, 32>}, {pipeline_mode = #tpu.pipeline_mode<synchronous>, transform_indices = @transform_1, window_bounds = array<i64: 168, 128>}, {transform_indices = @transform_2, window_bounds = array<i64: 16, 32>}]} {
    %c0 = arith.constant 0 : index
    %c0_0 = arith.constant 0 : index
    %0 = vector.load %arg1[%c0, %c0_0] : memref<16x32xf32, #tpu.memory_space<vmem>>, vector<16x32xf32>
    %c0_1 = arith.constant 0 : index
    %c0_2 = arith.constant 0 : index
    %1 = vector.load %arg2[%c0_1, %c0_2] : memref<168x128xf32, #tpu.memory_space<vmem>>, vector<32x64xf32>
    %c32 = arith.constant 32 : index
    %c0_3 = arith.constant 0 : index
    %2 = vector.load %arg2[%c32, %c0_3] : memref<168x128xf32, #tpu.memory_space<vmem>>, vector<64x64xf32>
    %c96 = arith.constant 96 : index
    %c0_4 = arith.constant 0 : index
    %3 = vector.load %arg2[%c96, %c0_4] : memref<168x128xf32, #tpu.memory_space<vmem>>, vector<64x32xf32>
    %c160 = arith.constant 160 : index
    %c0_5 = arith.constant 0 : index
    %4 = vector.load %arg2[%c160, %c0_5] : memref<168x128xf32, #tpu.memory_space<vmem>>, vector<8x128xf32>
    %5 = vector.extract_strided_slice %4 {offsets = [0, 0], sizes = [1, 64], strides = [1, 1]} : vector<8x128xf32> to vector<1x64xf32>
    %6 = vector.extract_strided_slice %4 {offsets = [1, 0], sizes = [1, 32], strides = [1, 1]} : vector<8x128xf32> to vector<1x32xf32>
    %7 = vector.extract_strided_slice %4 {offsets = [2, 0], sizes = [1, 32], strides = [1, 1]} : vector<8x128xf32> to vector<1x32xf32>
    %8 = vector.extract_strided_slice %4 {offsets = [3, 0], sizes = [1, 32], strides = [1, 1]} : vector<8x128xf32> to vector<1x32xf32>
    %cst = arith.constant dense<0.000000e+00> : vector<16x64xf32>
    %9 = tpu.matmul %0, %1, %cst {dimension_numbers = #tpu.dot_dimension_numbers<[1], [0], [0], [1], [0, 0, 1, 1], [], []>} : vector<16x32xf32>, vector<32x64xf32>, vector<16x64xf32> -> vector<16x64xf32>
    %10 = vector.broadcast %5 : vector<1x64xf32> to vector<16x64xf32>
    %11 = arith.addf %9, %10 : vector<16x64xf32>
    %12 = tpu.iota {dimensions = array<i32: 1>} : vector<16x64xi32>
    %cst_6 = arith.constant 0.000000e+00 : f32
    %13 = vector.broadcast %cst_6 : f32 to vector<16x64xf32>
    %c0_i32 = arith.constant 0 : i32
    %14 = vector.broadcast %c0_i32 : i32 to vector<16x64xi32>
    %15 = arith.cmpi sge, %12, %14 : vector<16x64xi32>
    %c4_i32 = arith.constant 4 : i32
    %16 = vector.broadcast %c4_i32 : i32 to vector<16x64xi32>
    %17 = arith.cmpi slt, %12, %16 : vector<16x64xi32>
    %18 = arith.andi %15, %17 : vector<16x64xi1>
    %cst_7 = arith.constant -1.000000e+30 : f32
    %19 = vector.broadcast %cst_7 : f32 to vector<16x64xf32>
    %20 = arith.select %18, %11, %19 : vector<16x64xi1>, vector<16x64xf32>
    %cst_8 = arith.constant dense<0xFF800000> : vector<16xf32>
    %21 = vector.multi_reduction <maximumf>, %20, %cst_8 [1] : vector<16x64xf32> to vector<16xf32>
    %22 = vector.shape_cast %21 : vector<16xf32> to vector<16x1xf32>
    %23 = vector.shape_cast %22 : vector<16x1xf32> to vector<16x1xf32>
    %24 = vector.broadcast %23 : vector<16x1xf32> to vector<16x64xf32>
    %25 = arith.select %18, %24, %13 : vector<16x64xi1>, vector<16x64xf32>
    %c4_i32_9 = arith.constant 4 : i32
    %26 = vector.broadcast %c4_i32_9 : i32 to vector<16x64xi32>
    %27 = arith.cmpi sge, %12, %26 : vector<16x64xi32>
    %c8_i32 = arith.constant 8 : i32
    %28 = vector.broadcast %c8_i32 : i32 to vector<16x64xi32>
    %29 = arith.cmpi slt, %12, %28 : vector<16x64xi32>
    %30 = arith.andi %27, %29 : vector<16x64xi1>
    %cst_10 = arith.constant -1.000000e+30 : f32
    %31 = vector.broadcast %cst_10 : f32 to vector<16x64xf32>
    %32 = arith.select %30, %11, %31 : vector<16x64xi1>, vector<16x64xf32>
    %cst_11 = arith.constant dense<0xFF800000> : vector<16xf32>
    %33 = vector.multi_reduction <maximumf>, %32, %cst_11 [1] : vector<16x64xf32> to vector<16xf32>
    %34 = vector.shape_cast %33 : vector<16xf32> to vector<16x1xf32>
    %35 = vector.shape_cast %34 : vector<16x1xf32> to vector<16x1xf32>
    %36 = vector.broadcast %35 : vector<16x1xf32> to vector<16x64xf32>
    %37 = arith.select %30, %36, %25 : vector<16x64xi1>, vector<16x64xf32>
    %c8_i32_12 = arith.constant 8 : i32
    %38 = vector.broadcast %c8_i32_12 : i32 to vector<16x64xi32>
    %39 = arith.cmpi sge, %12, %38 : vector<16x64xi32>
    %c12_i32 = arith.constant 12 : i32
    %40 = vector.broadcast %c12_i32 : i32 to vector<16x64xi32>
    %41 = arith.cmpi slt, %12, %40 : vector<16x64xi32>
    %42 = arith.andi %39, %41 : vector<16x64xi1>
    %cst_13 = arith.constant -1.000000e+30 : f32
    %43 = vector.broadcast %cst_13 : f32 to vector<16x64xf32>
    %44 = arith.select %42, %11, %43 : vector<16x64xi1>, vector<16x64xf32>
    %cst_14 = arith.constant dense<0xFF800000> : vector<16xf32>
    %45 = vector.multi_reduction <maximumf>, %44, %cst_14 [1] : vector<16x64xf32> to vector<16xf32>
    %46 = vector.shape_cast %45 : vector<16xf32> to vector<16x1xf32>
    %47 = vector.shape_cast %46 : vector<16x1xf32> to vector<16x1xf32>
    %48 = vector.broadcast %47 : vector<16x1xf32> to vector<16x64xf32>
    %49 = arith.select %42, %48, %37 : vector<16x64xi1>, vector<16x64xf32>
    %c12_i32_15 = arith.constant 12 : i32
    %50 = vector.broadcast %c12_i32_15 : i32 to vector<16x64xi32>
    %51 = arith.cmpi sge, %12, %50 : vector<16x64xi32>
    %c16_i32 = arith.constant 16 : i32
    %52 = vector.broadcast %c16_i32 : i32 to vector<16x64xi32>
    %53 = arith.cmpi slt, %12, %52 : vector<16x64xi32>
    %54 = arith.andi %51, %53 : vector<16x64xi1>
    %cst_16 = arith.constant -1.000000e+30 : f32
    %55 = vector.broadcast %cst_16 : f32 to vector<16x64xf32>
    %56 = arith.select %54, %11, %55 : vector<16x64xi1>, vector<16x64xf32>
    %cst_17 = arith.constant dense<0xFF800000> : vector<16xf32>
    %57 = vector.multi_reduction <maximumf>, %56, %cst_17 [1] : vector<16x64xf32> to vector<16xf32>
    %58 = vector.shape_cast %57 : vector<16xf32> to vector<16x1xf32>
    %59 = vector.shape_cast %58 : vector<16x1xf32> to vector<16x1xf32>
    %60 = vector.broadcast %59 : vector<16x1xf32> to vector<16x64xf32>
    %61 = arith.select %54, %60, %49 : vector<16x64xi1>, vector<16x64xf32>
    %c16_i32_18 = arith.constant 16 : i32
    %62 = vector.broadcast %c16_i32_18 : i32 to vector<16x64xi32>
    %63 = arith.cmpi sge, %12, %62 : vector<16x64xi32>
    %c28_i32 = arith.constant 28 : i32
    %64 = vector.broadcast %c28_i32 : i32 to vector<16x64xi32>
    %65 = arith.cmpi slt, %12, %64 : vector<16x64xi32>
    %66 = arith.andi %63, %65 : vector<16x64xi1>
    %cst_19 = arith.constant -1.000000e+30 : f32
    %67 = vector.broadcast %cst_19 : f32 to vector<16x64xf32>
    %68 = arith.select %66, %11, %67 : vector<16x64xi1>, vector<16x64xf32>
    %cst_20 = arith.constant dense<0xFF800000> : vector<16xf32>
    %69 = vector.multi_reduction <maximumf>, %68, %cst_20 [1] : vector<16x64xf32> to vector<16xf32>
    %70 = vector.shape_cast %69 : vector<16xf32> to vector<16x1xf32>
    %71 = vector.shape_cast %70 : vector<16x1xf32> to vector<16x1xf32>
    %72 = vector.broadcast %71 : vector<16x1xf32> to vector<16x64xf32>
    %73 = arith.select %66, %72, %61 : vector<16x64xi1>, vector<16x64xf32>
    %c28_i32_21 = arith.constant 28 : i32
    %74 = vector.broadcast %c28_i32_21 : i32 to vector<16x64xi32>
    %75 = arith.cmpi sge, %12, %74 : vector<16x64xi32>
    %c40_i32 = arith.constant 40 : i32
    %76 = vector.broadcast %c40_i32 : i32 to vector<16x64xi32>
    %77 = arith.cmpi slt, %12, %76 : vector<16x64xi32>
    %78 = arith.andi %75, %77 : vector<16x64xi1>
    %cst_22 = arith.constant -1.000000e+30 : f32
    %79 = vector.broadcast %cst_22 : f32 to vector<16x64xf32>
    %80 = arith.select %78, %11, %79 : vector<16x64xi1>, vector<16x64xf32>
    %cst_23 = arith.constant dense<0xFF800000> : vector<16xf32>
    %81 = vector.multi_reduction <maximumf>, %80, %cst_23 [1] : vector<16x64xf32> to vector<16xf32>
    %82 = vector.shape_cast %81 : vector<16xf32> to vector<16x1xf32>
    %83 = vector.shape_cast %82 : vector<16x1xf32> to vector<16x1xf32>
    %84 = vector.broadcast %83 : vector<16x1xf32> to vector<16x64xf32>
    %85 = arith.select %78, %84, %73 : vector<16x64xi1>, vector<16x64xf32>
    %c40_i32_24 = arith.constant 40 : i32
    %86 = vector.broadcast %c40_i32_24 : i32 to vector<16x64xi32>
    %87 = arith.cmpi sge, %12, %86 : vector<16x64xi32>
    %c52_i32 = arith.constant 52 : i32
    %88 = vector.broadcast %c52_i32 : i32 to vector<16x64xi32>
    %89 = arith.cmpi slt, %12, %88 : vector<16x64xi32>
    %90 = arith.andi %87, %89 : vector<16x64xi1>
    %cst_25 = arith.constant -1.000000e+30 : f32
    %91 = vector.broadcast %cst_25 : f32 to vector<16x64xf32>
    %92 = arith.select %90, %11, %91 : vector<16x64xi1>, vector<16x64xf32>
    %cst_26 = arith.constant dense<0xFF800000> : vector<16xf32>
    %93 = vector.multi_reduction <maximumf>, %92, %cst_26 [1] : vector<16x64xf32> to vector<16xf32>
    %94 = vector.shape_cast %93 : vector<16xf32> to vector<16x1xf32>
    %95 = vector.shape_cast %94 : vector<16x1xf32> to vector<16x1xf32>
    %96 = vector.broadcast %95 : vector<16x1xf32> to vector<16x64xf32>
    %97 = arith.select %90, %96, %85 : vector<16x64xi1>, vector<16x64xf32>
    %c52_i32_27 = arith.constant 52 : i32
    %98 = vector.broadcast %c52_i32_27 : i32 to vector<16x64xi32>
    %99 = arith.cmpi sge, %12, %98 : vector<16x64xi32>
    %c64_i32 = arith.constant 64 : i32
    %100 = vector.broadcast %c64_i32 : i32 to vector<16x64xi32>
    %101 = arith.cmpi slt, %12, %100 : vector<16x64xi32>
    %102 = arith.andi %99, %101 : vector<16x64xi1>
    %cst_28 = arith.constant -1.000000e+30 : f32
    %103 = vector.broadcast %cst_28 : f32 to vector<16x64xf32>
    %104 = arith.select %102, %11, %103 : vector<16x64xi1>, vector<16x64xf32>
    %cst_29 = arith.constant dense<0xFF800000> : vector<16xf32>
    %105 = vector.multi_reduction <maximumf>, %104, %cst_29 [1] : vector<16x64xf32> to vector<16xf32>
    %106 = vector.shape_cast %105 : vector<16xf32> to vector<16x1xf32>
    %107 = vector.shape_cast %106 : vector<16x1xf32> to vector<16x1xf32>
    %108 = vector.broadcast %107 : vector<16x1xf32> to vector<16x64xf32>
    %109 = arith.select %102, %108, %97 : vector<16x64xi1>, vector<16x64xf32>
    %110 = arith.subf %11, %109 : vector<16x64xf32>
    %111 = math.exp %110 : vector<16x64xf32>
    %cst_30 = arith.constant dense<0.000000e+00> : vector<16x64xf32>
    %112 = tpu.matmul %111, %2, %cst_30 {dimension_numbers = #tpu.dot_dimension_numbers<[1], [0], [0], [1], [0, 0, 1, 1], [], []>} : vector<16x64xf32>, vector<64x64xf32>, vector<16x64xf32> -> vector<16x64xf32>
    %113 = tpu.reciprocal %112 {approx = true} : vector<16x64xf32> -> vector<16x64xf32>
    %114 = arith.mulf %112, %113 : vector<16x64xf32>
    %cst_31 = arith.constant 2.000000e+00 : f32
    %115 = vector.broadcast %cst_31 : f32 to vector<16x64xf32>
    %116 = arith.subf %115, %114 : vector<16x64xf32>
    %117 = arith.mulf %113, %116 : vector<16x64xf32>
    %118 = arith.mulf %111, %117 : vector<16x64xf32>
    %cst_32 = arith.constant dense<0.000000e+00> : vector<16x32xf32>
    %119 = tpu.matmul %118, %3, %cst_32 {dimension_numbers = #tpu.dot_dimension_numbers<[1], [0], [0], [1], [0, 0, 1, 1], [], []>} : vector<16x64xf32>, vector<64x32xf32>, vector<16x32xf32> -> vector<16x32xf32>
    %120 = vector.broadcast %6 : vector<1x32xf32> to vector<16x32xf32>
    %121 = arith.addf %119, %120 : vector<16x32xf32>
    %cst_33 = arith.constant dense<0.000000e+00> : vector<16xf32>
    %122 = vector.multi_reduction <add>, %121, %cst_33 [1] : vector<16x32xf32> to vector<16xf32>
    %123 = vector.shape_cast %122 : vector<16xf32> to vector<16x1xf32>
    %cst_34 = arith.constant 3.200000e+01 : f32
    %124 = vector.broadcast %cst_34 : f32 to vector<16x1xf32>
    %125 = arith.divf %123, %124 : vector<16x1xf32>
    %126 = vector.broadcast %125 : vector<16x1xf32> to vector<16x32xf32>
    %127 = arith.subf %121, %126 : vector<16x32xf32>
    %128 = arith.mulf %127, %127 : vector<16x32xf32>
    %cst_35 = arith.constant dense<0.000000e+00> : vector<16xf32>
    %129 = vector.multi_reduction <add>, %128, %cst_35 [1] : vector<16x32xf32> to vector<16xf32>
    %130 = vector.shape_cast %129 : vector<16xf32> to vector<16x1xf32>
    %cst_36 = arith.constant 3.200000e+01 : f32
    %131 = vector.broadcast %cst_36 : f32 to vector<16x1xf32>
    %132 = arith.divf %130, %131 : vector<16x1xf32>
    %133 = vector.broadcast %125 : vector<16x1xf32> to vector<16x32xf32>
    %134 = arith.subf %121, %133 : vector<16x32xf32>
    %cst_37 = arith.constant 9.99999974E-6 : f32
    %135 = vector.broadcast %cst_37 : f32 to vector<16x1xf32>
    %136 = arith.addf %132, %135 : vector<16x1xf32>
    %137 = math.rsqrt %136 : vector<16x1xf32>
    %138 = vector.broadcast %137 : vector<16x1xf32> to vector<16x32xf32>
    %139 = arith.mulf %134, %138 : vector<16x32xf32>
    %140 = vector.broadcast %7 : vector<1x32xf32> to vector<16x32xf32>
    %141 = arith.mulf %139, %140 : vector<16x32xf32>
    %142 = vector.broadcast %8 : vector<1x32xf32> to vector<16x32xf32>
    %143 = arith.addf %141, %142 : vector<16x32xf32>
    %c0_38 = arith.constant 0 : index
    %c0_39 = arith.constant 0 : index
    %144 = vector.load %arg3[%c0_38, %c0_39] : memref<16x32xf32, #tpu.memory_space<vmem>>, vector<16x32xf32>
    tpu.vector_store %arg3[%c0_38, %c0_39], %143 {strides = array<i32>} : memref<16x32xf32, #tpu.memory_space<vmem>>, vector<16x32xf32>,
    return
  }
  func.func @transform_0(%arg0: i32) -> (i32, i32) {
    %c0_i32 = arith.constant 0 : i32
    %c0_i32_0 = arith.constant 0 : i32
    return %arg0, %c0_i32 : i32, i32
  }
  func.func @transform_1(%arg0: i32) -> (i32, i32) {
    %c0_i32 = arith.constant 0 : i32
    %c0_i32_0 = arith.constant 0 : i32
    %c0_i32_1 = arith.constant 0 : i32
    return %c0_i32, %c0_i32_0 : i32, i32
  }
  func.func @transform_2(%arg0: i32) -> (i32, i32) {
    %c0_i32 = arith.constant 0 : i32
    %c0_i32_0 = arith.constant 0 : i32
    return %arg0, %c0_i32 : i32, i32
  }
}

</mosaic_0001>

<bundles_post_ra>
// kernel: tpu_custom_call.1
= control target key start
LH: loop header
LB: loop body
LE: loop exit
PB: predicated region body
PF: predicated region fallthrough
CT: control target
= control target key end

     0   :  { %7 = vsyncpa [#allocation3], 0  ;;  %s943_s0 = inlined_call_operand.hbm [shape: f32[16,32], index: 0, kind: input, shape index: {}]   ;;  %s944_s1 = inlined_call_operand.hbm [shape: f32[168,128], index: 1, kind: input, shape index: {}]   ;;  %s945_s2 = inlined_call_operand.hbm [shape: f32[16,32], index: 2, kind: output, shape index: {}]  }
   0x1   :  { %8 = vsyncpa [#allocation6], 0 }
   0x2   :  { %9 = vsyncpa [#allocation4], 0  ;;  %s707_s9 = smov [#allocation2]   ;;  %s635_s13 = scalar_lea.hbm %s943_s0, 256 }
   0x3   :  { %s15_s10 = sshll.u32 %s707_s9, 4  ;;  %p636_p0 = scmp.ne.s32.totalorder %s943_s0, %s635_s13  ;;  %s16_s10 = int_to_ptr.vmem [resolvable:$true] %s15_s10 }
   0x4   :  { %p639_p1 = scmp.lt.u32.totalorder %s635_s13, %s943_s0 }
   0x6   :  { %p641_p2 = pnand %p639_p1, %p636_p0 }
   0x8   :  { %644 = shalt.err (!%p641_p2)
}
   0x9   :  { %s645_s18 = scalar_lea.vmem %s16_s10, 256  ;;  %p650_p4 = scmp.lt.s32.totalorder %s16_s10, %s16_s10 }
   0xa   :  { %p646_p3 = scmp.ne.s32.totalorder %s16_s10, %s645_s18  ;;  %p651_p5 = scmp.lt.s32.totalorder %s645_s18, %s645_s18 }
   0xc   :  { %p652_p6 = por %p651_p5, %p650_p4 }
   0xe   :  { %p653_p7 = pnand %p652_p6, %p646_p3 }
  0x10   :  { %656 = shalt.err (!%p653_p7)
}
  0x11   :  { %s708_s19 = smov 128   ;;  %s709_s20 = smov 8  }
  0x12   :  { %21 = dma.hbm_to_vmem [thread:$0]  %s943_s0, 256, %s16_s10, [#allocation3], %s708_s19, %s708_s19, %s709_s20  }
  0x13   :  { %s710_s23 = smov [#allocation5]   ;;  %s657_s27 = scalar_lea.hbm %s944_s1, 2688 }
  0x14   :  { %s27_s24 = sshll.u32 %s710_s23, 4  ;;  %p658_p8 = scmp.ne.s32.totalorder %s944_s1, %s657_s27  ;;  %s28_s24 = int_to_ptr.vmem [resolvable:$true] %s27_s24 }
  0x15   :  { %p661_p9 = scmp.lt.u32.totalorder %s657_s27, %s944_s1 }
  0x17   :  { %p663_p10 = pnand %p661_p9, %p658_p8 }
  0x19   :  { %666 = shalt.err (!%p663_p10)
}
  0x1a   :  { %s667_s4 = scalar_lea.vmem %s28_s24, 2688  ;;  %p672_p12 = scmp.lt.s32.totalorder %s28_s24, %s28_s24 }
  0x1b   :  { %p668_p11 = scmp.ne.s32.totalorder %s28_s24, %s667_s4  ;;  %p673_p13 = scmp.lt.s32.totalorder %s667_s4, %s667_s4 }
  0x1d   :  { %p674_p0 = por %p673_p13, %p672_p12 }
  0x1f   :  { %p675_p1 = pnand %p674_p0, %p668_p11 }
  0x21   :  { %678 = shalt.err (!%p675_p1)
}
  0x22   :  { %33 = dma.hbm_to_vmem [thread:$0]  %s944_s1, 2688, %s28_s24, [#allocation6], %s708_s19, %s708_s19, %s709_s20  }
  0x23   :  { %701 = dma.done.wait [#allocation3], 256  }
  0x24   :  { %702 = vsyncadd [#allocation3], 4294967040 }
  0x25   :  { %703 = dma.done.wait [#allocation6], 2688  }
  0x26   :  { %704 = vsyncadd [#allocation6], 4294964608  ;;  %vm67_vm0 = vcmask 261120   ;;  %v42_v0 = vld [vmem:[#allocation5] sm:$0xff]  ;;  %v43_v1 = vld [vmem:[#allocation5 + $0x8] sm:$0xff]  ;;  %v63_v8 = vlaneseq  ;;  %vm156_vm7 = vcmask 523264  }
  0x27   :  { %v44_v2 = vld [vmem:[#allocation5 + $0x10] sm:$0xff]  ;;  %v578_v3 = vpack.c.bf16 %v43_v1, %v42_v0  ;;  %v45_v4 = vld [vmem:[#allocation5 + $0x18] sm:$0xff]  ;;  %v764_v12 = vld [vmem:[#allocation5 + $0xa0] sm:$0xff]  ;;  %s711_s1 = smov [#allocation7]  }
  0x28   :  { %v40_v5 = vld [vmem:[#allocation2] sm:$0xff]  ;;  %v582_v6 = vpack.c.bf16 %v45_v4, %v44_v2  ;;  %v41_v7 = vld [vmem:[#allocation2 + $0x8] sm:$0xff]  ;;  %v759_v9 = vshrl.u32 %v63_v8, 7  ;;  %v762_v11 = vand.u32 127, %v63_v8  ;;  %v46_v57 = vld [vmem:[#allocation5 + $0x20] sm:$0xff]  ;;  %s484_s6 = sshll.u32 %s711_s1, 4  ;;  %s485_s6 = int_to_ptr.vmem [resolvable:$true] %s484_s6 }
  0x29   :  { %537 = vmatprep.mubr.msk.f32.mxu0 %vm67_vm0, %v40_v5  ;;  %579 = vmatprep.subr.bf16.mxu0 %v578_v3  ;;  %v47_v58 = vld [vmem:[#allocation5 + $0x28] sm:$0xff]  ;;  %v48_v60 = vld [vmem:[#allocation5 + $0x30] sm:$0xff]  ;;  %v49_v61 = vld [vmem:[#allocation5 + $0x38] sm:$0xff]  ;;  %s679_s7 = scalar_lea.vmem %s485_s6, 256  ;;  %p684_p3 = scmp.lt.s32.totalorder %s485_s6, %s485_s6 }
  0x2a   :  { %581 = vmatpush3.bf16.msra.mxu0 %v578_v3  ;;  %v65_v10 = vsub.s32 0, %v759_v9  ;;  %vm165_vm1 = vcmp.ge.s32.totalorder %v762_v11, 4  ;;  %vm166_vm2 = vcmp.lt.s32.totalorder %v762_v11, 8  ;;  %vm178_vm3 = vcmp.ge.s32.totalorder %v762_v11, 8  ;;  %v50_v63 = vld [vmem:[#allocation5 + $0x40] sm:$0xff]  ;;  %v51_v0 = vld [vmem:[#allocation5 + $0x48] sm:$0xff]  ;;  %p680_p2 = scmp.ne.s32.totalorder %s485_s6, %s679_s7  ;;  %p685_p4 = scmp.lt.s32.totalorder %s679_s7, %s679_s7 }
  0x2b   :  { %583 = vmatprep.subr.bf16.mxu0 %v582_v6  ;;  %vm179_vm4 = vcmp.lt.s32.totalorder %v762_v11, 12  ;;  %vm771_vm5 = vmand %vm165_vm1, %vm166_vm2  ;;  %vm152_vm6 = vcmp.lt.s32.totalorder %v762_v11, 4  ;;  %vm191_vm9 = vcmp.ge.s32.totalorder %v762_v11, 12  ;;  %vm192_vm10 = vcmp.lt.s32.totalorder %v762_v11, 16  ;;  %v52_v2 = vld [vmem:[#allocation5 + $0x50] sm:$0xff]  ;;  %v53_v3 = vld [vmem:[#allocation5 + $0x58] sm:$0xff] }
  0x2c   :  { %v66_v13 = vrot.slane %v764_v12, %v65_v10  ;;  %vm780_vm8 = vmand %vm178_vm3, %vm179_vm4  ;;  %vm204_vm12 = vcmp.ge.s32.totalorder %v762_v11, 16  ;;  %vm205_vm13 = vcmp.lt.s32.totalorder %v762_v11, 28  ;;  %vm217_vm15 = vcmp.ge.s32.totalorder %v762_v11, 28  ;;  %v54_v45 = vld [vmem:[#allocation5 + $0x60] sm:$0xff]  ;;  %v56_v50 = vld [vmem:[#allocation5 + $0x70] sm:$0xff]  ;;  %p686_p5 = por %p685_p4, %p684_p3 }
  0x2d   :  { %vm800_vm11 = vmand %vm191_vm9, %vm192_vm10  ;;  %vm218_vm1 = vcmp.lt.s32.totalorder %v762_v11, 40  ;;  %vm230_vm3 = vcmp.ge.s32.totalorder %v762_v11, 40  ;;  %vm231_vm4 = vcmp.lt.s32.totalorder %v762_v11, 52  ;;  %vm243_vm10 = vcmp.ge.s32.totalorder %v762_v11, 52 }
  0x2e   :  { %585 = vmatpush3.bf16.msra.mxu0 %v582_v6  ;;  %vm814_vm14 = vmand %vm204_vm12, %vm205_vm13  ;;  %vm244_vm12 = vcmp.lt.s32.totalorder %v762_v11, 64  ;;  %v586_v59 = vpack.c.bf16 %v47_v58, %v46_v57  ;;  %v590_v62 = vpack.c.bf16 %v49_v61, %v48_v60  ;;  %v594_v1 = vpack.c.bf16 %v51_v0, %v50_v63  ;;  %p687_p6 = pnand %p686_p5, %p680_p2 }
  0x2f   :  { %vm828_vm2 = vmand %vm217_vm15, %vm218_vm1  ;;  %v598_v4 = vpack.c.bf16 %v53_v3, %v52_v2 }
  0x30   :  { %vm850_vm9 = vmand %vm230_vm3, %vm231_vm4  ;;  %587 = vmatprep.subr.bf16.mxu1 %v586_v59 }
  0x31   :  { %538 = vmatmul.mubr.msk.f32.vlgmr.msra.gmra.mrb[0].mxu0 %vm67_vm0, %v41_v7  ;;  %vm864_vm13 = vmand %vm243_vm10, %vm244_vm12  ;;  %589 = vmatpush3.bf16.msra.mxu1 %v586_v59 }
  0x32   :  { %591 = vmatprep.subr.bf16.mxu1 %v590_v62 }
  0x35   :  { %593 = vmatpush3.bf16.msra.mxu1 %v590_v62 }
  0x36   :  { %595 = vmatprep.subr.bf16.mxu1 %v594_v1 }
  0x39   :  { %597 = vmatpush3.bf16.msra.mxu1 %v594_v1 }
  0x3a   :  { %599 = vmatprep.subr.bf16.mxu1 %v598_v4 }
  0x3d   :  { %601 = vmatpush3.bf16.msra.mxu1 %v598_v4 }
 0x104   :  { %v539_v14 = vpop.f32.mrb[0].mxu0 }
 0x105   :  { %v776_v16 = vadd.f32 %v539_v14, %v66_v13  ;;  %v140_v17 = vpop.f32.mrb[1].mxu0 }
 0x106   :  { %v778_v18 = vadd.f32 %v140_v17, %v66_v13 }
 0x107   :  { %v169_v20 = vsel %vm771_vm5, %v776_v16, -1e+30  ;;  %v155_v21 = vsel %vm152_vm6, %v776_v16, -1e+30  ;;  %v182_v24 = vsel %vm780_vm8, %v776_v16, -1e+30 }
 0x108   :  { %v173_v22 = vsel %vm156_vm7, %v169_v20, -inf  ;;  %v160_v23 = vsel %vm156_vm7, %v155_v21, -inf  ;;  %v154_v25 = vsel %vm152_vm6, %v778_v18, -1e+30  ;;  %v186_v27 = vsel %vm156_vm7, %v182_v24, -inf }
 0x109   :  { %174 = vmax.xlane.f32.xlu1 %v173_v22  ;;  %161 = vmax.xlane.f32.xlu0 %v160_v23  ;;  %v157_v28 = vsel %vm156_vm7, %v154_v25, -inf  ;;  %v195_v29 = vsel %vm800_vm11, %v776_v16, -1e+30  ;;  %v181_v30 = vsel %vm780_vm8, %v778_v18, -1e+30 }
 0x10a   :  { %v199_v32 = vsel %vm156_vm7, %v195_v29, -inf  ;;  %v183_v33 = vsel %vm156_vm7, %v181_v30, -inf  ;;  %v208_v34 = vsel %vm814_vm14, %v776_v16, -1e+30  ;;  %v194_v35 = vsel %vm800_vm11, %v778_v18, -1e+30 }
 0x10b   :  { %v212_v37 = vsel %vm156_vm7, %v208_v34, -inf  ;;  %v196_v38 = vsel %vm156_vm7, %v194_v35, -inf  ;;  %v221_v39 = vsel %vm828_vm2, %v776_v16, -1e+30  ;;  %v207_v40 = vsel %vm814_vm14, %v778_v18, -1e+30 }
 0x10c   :  { %v225_v41 = vsel %vm156_vm7, %v221_v39, -inf  ;;  %v209_v42 = vsel %vm156_vm7, %v207_v40, -inf  ;;  %v168_v43 = vsel %vm771_vm5, %v778_v18, -1e+30  ;;  %v220_v44 = vsel %vm828_vm2, %v778_v18, -1e+30 }
 0x10d   :  { %187 = vmax.xlane.f32.xlu1 %v186_v27  ;;  %158 = vmax.xlane.f32.xlu0 %v157_v28  ;;  %v170_v46 = vsel %vm156_vm7, %v168_v43, -inf  ;;  %v222_v47 = vsel %vm156_vm7, %v220_v44, -inf  ;;  %v234_v48 = vsel %vm850_vm9, %v776_v16, -1e+30  ;;  %v233_v49 = vsel %vm850_vm9, %v778_v18, -1e+30 }
 0x10e   :  { %v238_v51 = vsel %vm156_vm7, %v234_v48, -inf  ;;  %v235_v52 = vsel %vm156_vm7, %v233_v49, -inf  ;;  %v247_v53 = vsel %vm864_vm13, %v776_v16, -1e+30  ;;  %v246_v54 = vsel %vm864_vm13, %v778_v18, -1e+30 }
 0x10f   :  { %v251_v55 = vsel %vm156_vm7, %v247_v53, -inf  ;;  %v248_v56 = vsel %vm156_vm7, %v246_v54, -inf  ;;  %v55_v48 = vld [vmem:[#allocation5 + $0x68] sm:$0xff]  ;;  %v60_v54 = vld [vmem:[#allocation5 + $0x90] sm:$0xff] }
 0x110   :  { %v602_v49 = vpack.c.bf16 %v55_v48, %v54_v45 }
 0x111   :  { %200 = vmax.xlane.f32.xlu1 %v199_v32  ;;  %184 = vmax.xlane.f32.xlu0 %v183_v33 }
 0x112   :  { %603 = vmatprep.subr.bf16.mxu0 %v602_v49 }
 0x113   :  { %605 = vmatpush3.bf16.msra.mxu0 %v602_v49 }
 0x115   :  { %213 = vmax.xlane.f32.xlu1 %v212_v37  ;;  %197 = vmax.xlane.f32.xlu0 %v196_v38 }
 0x119   :  { %226 = vmax.xlane.f32.xlu1 %v225_v41  ;;  %210 = vmax.xlane.f32.xlu0 %v209_v42 }
 0x11d   :  { %171 = vmax.xlane.f32.xlu1 %v170_v46  ;;  %223 = vmax.xlane.f32.xlu0 %v222_v47 }
 0x121   :  { %239 = vmax.xlane.f32.xlu1 %v238_v51  ;;  %236 = vmax.xlane.f32.xlu0 %v235_v52  ;;  %v57_v51 = vld [vmem:[#allocation5 + $0x78] sm:$0xff]  ;;  %v59_v52 = vld [vmem:[#allocation5 + $0x88] sm:$0xff] }
 0x125   :  { %252 = vmax.xlane.f32.xlu1 %v251_v55  ;;  %249 = vmax.xlane.f32.xlu0 %v248_v56  ;;  %v61_v55 = vld [vmem:[#allocation5 + $0x98] sm:$0xff] }
 0x126   :  { %v614_v56 = vpack.c.bf16 %v61_v55, %v60_v54 }
 0x196   :  { %v175_v5 = vpop.xlane.xlu1 %174  ;;  %v162_v6 = vpop.xlane.xlu0 %161 }
 0x197   :  { %v164_v22 = vsel %vm152_vm6, %v162_v6, 0.0 }
 0x198   :  { %v177_v29 = vsel %vm771_vm5, %v175_v5, %v164_v22  ;;  %v355_v5 = vsub.s32 1, %v759_v9 }
 0x19a   :  { %v188_v7 = vpop.xlane.xlu1 %187  ;;  %v159_v8 = vpop.xlane.xlu0 %158  ;;  %v356_v6 = vrot.slane %v764_v12, %v355_v5 }
 0x19b   :  { %v163_v23 = vsel %vm152_vm6, %v159_v8, 0.0  ;;  %v190_v32 = vsel %vm780_vm8, %v188_v7, %v177_v29 }
 0x19e   :  { %v201_v10 = vpop.xlane.xlu1 %200  ;;  %v185_v13 = vpop.xlane.xlu0 %184 }
 0x19f   :  { %v203_v35 = vsel %vm800_vm11, %v201_v10, %v190_v32 }
 0x1a2   :  { %v214_v14 = vpop.xlane.xlu1 %213  ;;  %v198_v17 = vpop.xlane.xlu0 %197 }
 0x1a3   :  { %v216_v15 = vsel %vm814_vm14, %v214_v14, %v203_v35 }
 0x1a6   :  { %v227_v20 = vpop.xlane.xlu1 %226  ;;  %v211_v21 = vpop.xlane.xlu0 %210 }
 0x1a7   :  { %v229_v38 = vsel %vm828_vm2, %v227_v20, %v216_v15  ;;  %v467_v15 = vsub.s32 2, %v759_v9 }
 0x1aa   :  { %v172_v24 = vpop.xlane.xlu1 %171  ;;  %v224_v25 = vpop.xlane.xlu0 %223 }
 0x1ab   :  { %v176_v27 = vsel %vm771_vm5, %v172_v24, %v163_v23 }
 0x1ac   :  { %v189_v28 = vsel %vm780_vm8, %v185_v13, %v176_v27 }
 0x1ad   :  { %v202_v30 = vsel %vm800_vm11, %v198_v17, %v189_v28 }
 0x1ae   :  { %v215_v11 = vsel %vm814_vm14, %v211_v21, %v202_v30  ;;  %v240_v33 = vpop.xlane.xlu1 %239  ;;  %v237_v34 = vpop.xlane.xlu0 %236 }
 0x1af   :  { %v228_v37 = vsel %vm828_vm2, %v224_v25, %v215_v11  ;;  %v242_v19 = vsel %vm850_vm9, %v240_v33, %v229_v38  ;;  %v473_v38 = vsub.s32 3, %v759_v9 }
 0x1b0   :  { %v241_v39 = vsel %vm850_vm9, %v237_v34, %v228_v37 }
 0x1b2   :  { %v253_v40 = vpop.xlane.xlu1 %252  ;;  %v250_v41 = vpop.xlane.xlu0 %249 }
 0x1b3   :  { %v255_v26 = vsel %vm864_vm13, %v253_v40, %v242_v19  ;;  %v254_v42 = vsel %vm864_vm13, %v250_v41, %v241_v39  ;;  %v468_v19 = vrot.slane %v764_v12, %v467_v15 }
 0x1b4   :  { %v257_v31 = vsub.f32 %v776_v16, %v255_v26  ;;  %v256_v43 = vsub.f32 %v778_v18, %v254_v42  ;;  %v606_v16 = vpack.c.bf16 %v57_v51, %v56_v50  ;;  %v58_v18 = vld [vmem:[#allocation5 + $0x80] sm:$0xff]  ;;  %v474_v26 = vrot.slane %v764_v12, %v473_v38 }
 0x1b5   :  { %v610_v53 = vpack.c.bf16 %v59_v52, %v58_v18 }
 0x1b6   :  { %v260_v36 = vmul.f32 1.442695, %v257_v31  ;;  %v258_v44 = vmul.f32 1.442695, %v256_v43  ;;  %607 = vmatprep.subr.bf16.mxu0 %v606_v16 }
 0x1b7   :  { %609 = vmatpush3.bf16.msra.mxu0 %v606_v16 }
 0x1b8   :  { %623 = vpow2.f32 %v260_v36  ;;  %611 = vmatprep.subr.bf16.mxu0 %v610_v53 }
 0x1b9   :  { %625 = vpow2.f32 %v258_v44 }
 0x1bb   :  { %613 = vmatpush3.bf16.msra.mxu0 %v610_v53 }
 0x1bc   :  { %615 = vmatprep.subr.bf16.mxu0 %v614_v56 }
 0x1bf   :  { %617 = vmatpush3.bf16.msra.mxu0 %v614_v56 }
 0x1c2   :  { %v624_v46 = vpop.eup %623 }
 0x1c3   :  { %v626_v47 = vpop.eup %625 }
 0x1c4   :  { %556 = vmatprep.mubr.msk.f32.mxu1 %vm156_vm7, %v626_v47 }
 0x1c5   :  { %557 = vmatmul.mubr.msk.f32.vlgmr.msra.gmra.mrb[0].mxu1 %vm156_vm7, %v624_v46 }
 0x298   :  { %v558_v57 = vpop.f32.mrb[0].mxu1 }
 0x299   :  { %627 = vrcp.f32 %v558_v57  ;;  %v334_v58 = vpop.f32.mrb[1].mxu1 }
 0x29a   :  { %629 = vrcp.f32 %v334_v58 }
 0x2a3   :  { %v628_v59 = vpop.eup %627 }
 0x2a4   :  { %v630_v60 = vpop.eup %629  ;;  %v346_v61 = vmul.f32 %v628_v59, %v558_v57 }
 0x2a5   :  { %v345_v62 = vmul.f32 %v630_v60, %v334_v58 }
 0x2a6   :  { %v348_v63 = vsub.f32 2.0, %v346_v61 }
 0x2a7   :  { %v347_v0 = vsub.f32 2.0, %v345_v62 }
 0x2a8   :  { %v350_v1 = vmul.f32 %v628_v59, %v348_v63 }
 0x2a9   :  { %v349_v2 = vmul.f32 %v630_v60, %v347_v0 }
 0x2aa   :  { %v352_v4 = vmul.f32 %v624_v46, %v350_v1 }
 0x2ab   :  { %v351_v3 = vmul.f32 %v626_v47, %v349_v2 }
 0x2ad   :  { %575 = vmatprep.mubr.msk.f32.mxu0 %vm156_vm7, %v351_v3 }
 0x2ae   :  { %576 = vmatmul.mubr.msk.f32.vlgmr.msra.gmra.mrb[2].mxu0 %vm156_vm7, %v352_v4 }
 0x381   :  { %v577_v7 = vpop.f32.mrb[2].mxu0 }
 0x382   :  { %v435_v8 = vadd.f32 %v577_v7, %v356_v6  ;;  %v429_v10 = vpop.f32.mrb[3].mxu0 }
 0x383   :  { %v430_v13 = vadd.f32 %v429_v10, %v356_v6 }
 0x384   :  { %v441_v14 = vsel %vm67_vm0, %v435_v8, 0.0 }
 0x385   :  { %442 = vadd.xlane.f32.xlu1 %v441_v14  ;;  %v438_v17 = vsel %vm67_vm0, %v430_v13, 0.0 }
 0x386   :  { %439 = vadd.xlane.f32.xlu0 %v438_v17 }
 0x412   :  { %v443_v20 = vpop.xlane.xlu1 %442 }
 0x413   :  { %v446_v21 = vmul.f32 0.03125, %v443_v20  ;;  %v440_v22 = vpop.xlane.xlu0 %439 }
 0x414   :  { %v445_v23 = vmul.f32 0.03125, %v440_v22 }
 0x415   :  { %v448_v24 = vsub.f32 %v435_v8, %v446_v21 }
 0x416   :  { %v447_v25 = vsub.f32 %v430_v13, %v445_v23 }
 0x417   :  { %v450_v27 = vmul.f32 %v448_v24, %v448_v24 }
 0x418   :  { %v449_v28 = vmul.f32 %v447_v25, %v447_v25 }
 0x419   :  { %v454_v29 = vsel %vm67_vm0, %v450_v27, 0.0 }
 0x41a   :  { %455 = vadd.xlane.f32.xlu1 %v454_v29  ;;  %v451_v30 = vsel %vm67_vm0, %v449_v28, 0.0 }
 0x41b   :  { %452 = vadd.xlane.f32.xlu0 %v451_v30 }
 0x4a7   :  { %v456_v32 = vpop.xlane.xlu1 %455 }
 0x4a8   :  { %v458_v11 = vmul.f32 0.03125, %v456_v32  ;;  %v453_v33 = vpop.xlane.xlu0 %452 }
 0x4a9   :  { %v457_v34 = vmul.f32 0.03125, %v453_v33 }
 0x4aa   :  { %v460_v35 = vadd.f32 1e-05, %v458_v11 }
 0x4ab   :  { %v459_v37 = vadd.f32 1e-05, %v457_v34 }
 0x4ac   :  { %631 = vrsqrt.f32 %v460_v35 }
 0x4ad   :  { %633 = vrsqrt.f32 %v459_v37 }
 0x4b6   :  { %v632_v39 = vpop.eup %631 }
 0x4b7   :  { %v634_v40 = vpop.eup %633  ;;  %v464_v41 = vmul.f32 %v632_v39, %v448_v24 }
 0x4b8   :  { %v463_v42 = vmul.f32 %v634_v40, %v447_v25 }
 0x4b9   :  { %v470_v31 = vmul.f32 %v468_v19, %v464_v41 }
 0x4ba   :  { %v469_v43 = vmul.f32 %v468_v19, %v463_v42 }
 0x4bb   :  { %v476_v36 = vadd.f32 %v474_v26, %v470_v31 }
 0x4bc   :  { %v475_v44 = vadd.f32 %v474_v26, %v469_v43 }
 0x4bd   :  { %478 = vst.msk [vmem:[#allocation7 + $0x8] sm:$0xff] %vm67_vm0, %v476_v36 }
 0x4be   :  { %477 = vst.msk [vmem:[#allocation7] sm:$0xff] %vm67_vm0, %v475_v44 }
 0x4bf   :  { %690 = shalt.err (!%p687_p6)
}
 0x4c0   :  { %s691_s10 = scalar_lea.hbm %s945_s2, 256 }
 0x4c1   :  { %p692_p7 = scmp.ne.s32.totalorder %s945_s2, %s691_s10  ;;  %p695_p8 = scmp.lt.u32.totalorder %s691_s10, %s945_s2 }
 0x4c3   :  { %p697_p9 = pnand %p695_p8, %p692_p7 }
 0x4c5   :  { %700 = shalt.err (!%p697_p9)
}
 0x4c6   :  { %490 = dma.vmem_to_hbm [thread:$0]  %s485_s6, 256, %s945_s2, [#allocation4], %s708_s19, %s708_s19, %s709_s20  }
 0x4c7   :  { %705 = dma.done.wait [#allocation4], 256  }
 0x4c8   :  { %706 = vsyncadd [#allocation4], 4294967040 }
 0x4c9   :  { %494 = vsyncpa [#allocation3], 1 }
 0x4ca   :  { %495 = vsyncpa [#allocation6], 1 }
 0x4cb   :  { %496 = vsyncpa [#allocation4], 1 }

</bundles_post_ra>
